<compile_context>
chip_gen: v7x
topology: tpu7x:2x2x1
jax: 0.10.0
libtpu: 0.0.40
codegen_flags: <defaults>
</compile_context>

<pallas_src>
import functools

import jax
import jax.numpy as jnp
from jax.experimental import pallas as pl
from jax.experimental.pallas import tpu as pltpu

LANE = 128
SUBLANE = 8


def _round_up(n, m):
    return ((n + m - 1) // m) * m


# ----------------------------- Pallas kernel ------------------------------ #
def encoder_kernel(x_meas_ref, x_dem_ref, a_stack_ref, a_md_ref,
                   w1_ref, b1_ref, w2_ref, b2_ref, w3_ref, b3_ref,
                   w_lin_ref, b_lin_ref, out_ref, *, n_meas, split):
    x_meas = x_meas_ref[...]          # [Nm, Fm_p]  lane-padded (zeros beyond Fm)
    x_dem = x_dem_ref[...]            # [Nd, Fd_p]

    # conv1 + conv2 aggregation in one MXU pass:
    # a_stack = [a_mm (rows padded to a sublane multiple) ; a_md], shared RHS x_meas.
    agg12 = jnp.dot(a_stack_ref[...], x_meas, preferred_element_type=jnp.float32)
    agg1 = agg12[:n_meas, :]          # leading slice
    agg2 = agg12[split:, :]           # split is a multiple of 8 (sublane aligned)

    # conv1: lin_rel(A_mm @ x) + lin_root(x) as ONE fused dot.
    # [agg1 | x_meas] is a vreg-aligned lane concat; w1 = [w_rel1 ; w_root1].
    movie_x = jnp.maximum(
        jnp.dot(jnp.concatenate([agg1, x_meas], axis=1), w1_ref[...],
                preferred_element_type=jnp.float32) + b1_ref[...], 0.0)

    # conv2: same fusion for the (x_meas -> x_dem) bipartite conv.
    user_x = jnp.maximum(
        jnp.dot(jnp.concatenate([agg2, x_dem], axis=1), w2_ref[...],
                preferred_element_type=jnp.float32) + b2_ref[...], 0.0)

    # conv3: aggregate movie_x over the same weighted edges, then fused rel+root.
    agg3 = jnp.dot(a_md_ref[...], movie_x, preferred_element_type=jnp.float32)
    user_x = jnp.maximum(
        jnp.dot(jnp.concatenate([agg3, user_x], axis=1), w3_ref[...],
                preferred_element_type=jnp.float32) + b3_ref[...], 0.0)

    # final linear head
    out_ref[...] = (jnp.dot(user_x, w_lin_ref[...],
                            preferred_element_type=jnp.float32) + b_lin_ref[...])


# ------------------------------ wrapper ------------------------------------ #
def encoder_gnn_u_weighted(x_meas, x_dem, a_mm, a_md_w, params):
    """Fused forward. a_mm: [Nm,Nm] (dst,src) unweighted adjacency;
    a_md_w: [Nd,Nm] sigmoid-weighted adjacency. Returns [Nd, out_ch] float32."""
    n_meas, f_meas = x_meas.shape
    n_dem, f_dem = x_dem.shape
    hidden = params["w_rel1"].shape[1]
    out_ch = params["w_lin"].shape[1]

    fmp = _round_up(f_meas, LANE)          # lane-padded feature / hidden widths
    fdp = _round_up(f_dem, LANE)
    hp = _round_up(hidden, LANE)
    split = _round_up(n_meas, SUBLANE)     # sublane-aligned row split of a_stack

    def pad_cols(x, w):
        return jnp.pad(x, ((0, 0), (0, w - x.shape[1])))

    def pad_rows(x, h):
        return jnp.pad(x, ((0, h - x.shape[0]), (0, 0)))

    # Lane-pad node features once (padded lanes are zero -> exact math).
    x_meas_p = pad_cols(x_meas.astype(jnp.float32), fmp)
    x_dem_p = pad_cols(x_dem.astype(jnp.float32), fdp)

    # conv1 and conv2 share the RHS x_meas: stack adjacencies row-wise so both
    # aggregations become one MXU pass in the kernel.
    a_stack = jnp.concatenate(
        [pad_rows(a_mm.astype(jnp.float32), split), a_md_w.astype(jnp.float32)],
        axis=0)

    # Fuse each conv's (rel, root) weight pair; row layout matches the kernel's
    # lane-aligned [agg | x_dst] concat, padded rows/cols are zero.
    def fused_w(w_rel, w_root, k_rel, k_root, n_out):
        w = jnp.concatenate([pad_rows(w_rel, k_rel), pad_rows(w_root, k_root)],
                            axis=0)
        return pad_cols(w, n_out).astype(jnp.float32)

    w1 = fused_w(params["w_rel1"], params["w_root1"], fmp, fmp, hp)    # [2*fmp, hp]
    b1 = pad_cols(params["b_rel1"], hp)
    w2 = fused_w(params["w_rel2"], params["w_root2"], fmp, fdp, hp)    # [fmp+fdp, hp]
    b2 = pad_cols(params["b_rel2"], hp)
    w3 = fused_w(params["w_rel3"], params["w_root3"], hp, hp, hidden)  # [2*hp, hidden]
    b3 = params["b_rel3"]

    args = (x_meas_p, x_dem_p, a_stack, a_md_w.astype(jnp.float32),
            w1, b1, w2, b2, w3, b3, params["w_lin"], params["b_lin"])
    vmem = pl.BlockSpec(memory_space=pltpu.MemorySpace.VMEM)
    kernel = functools.partial(encoder_kernel, n_meas=n_meas, split=split)
    return pl.pallas_call(
        kernel,
        out_shape=jax.ShapeDtypeStruct((n_dem, out_ch), jnp.float32),
        in_specs=[vmem] * len(args),
        out_specs=vmem,
    )(*args)


# ------------------------------ JAX glue ---------------------------------- #
def build_adjacencies(edge_mm, edge_md, edge_weight, n_meas, n_dem):
    """edge_index convention (PyG): row 0 = source nodes, row 1 = target nodes."""
    a_mm = jnp.zeros((n_meas, n_meas), jnp.float32).at[
        edge_mm[1], edge_mm[0]].add(1.0)
    ew = jax.nn.sigmoid(edge_weight.astype(jnp.float32))   # F.sigmoid(edge_weight)
    a_md = jnp.zeros((n_dem, n_meas), jnp.float32).at[
        edge_md[1], edge_md[0]].add(ew)
    return a_mm, a_md


def init_params(key, f_meas, f_dem, hidden, out_ch):
    ks = jax.random.split(key, 8)

    def lin(k, fan_in, fan_out):
        bound = 1.0 / jnp.sqrt(fan_in)
        return jax.random.uniform(k, (fan_in, fan_out), jnp.float32, -bound, bound)

    lin_bound = 1.0 / jnp.sqrt(hidden)
    return {
        "w_rel1": lin(ks[0], f_meas, hidden), "b_rel1": jnp.zeros((1, hidden), jnp.float32),
        "w_root1": lin(ks[1], f_meas, hidden),
        "w_rel2": lin(ks[2], f_meas, hidden), "b_rel2": jnp.zeros((1, hidden), jnp.float32),
        "w_root2": lin(ks[3], f_dem, hidden),
        "w_rel3": lin(ks[4], hidden, hidden), "b_rel3": jnp.zeros((1, hidden), jnp.float32),
        "w_root3": lin(ks[5], hidden, hidden),
        "w_lin": lin(ks[6], hidden, out_ch),
        "b_lin": jax.random.uniform(ks[7], (1, out_ch), jnp.float32,
                                    -lin_bound, lin_bound),
    }


def reference_forward(x_meas, x_dem, a_mm, a_md, p):
    movie_x = jax.nn.relu(a_mm @ x_meas @ p["w_rel1"] + p["b_rel1"] + x_meas @ p["w_root1"])
    user_x = jax.nn.relu(a_md @ x_meas @ p["w_rel2"] + p["b_rel2"] + x_dem @ p["w_root2"])
    user_x = jax.nn.relu(a_md @ movie_x @ p["w_rel3"] + p["b_rel3"] + user_x @ p["w_root3"])
    return user_x @ p["w_lin"] + p["b_lin"]


# -------------------------------- main ------------------------------------ #
if __name__ == "__main__":
    key = jax.random.PRNGKey(0)
    k_xm, k_xd, k_emm, k_emd, k_ew, k_par = jax.random.split(key, 6)

    N_MEAS, N_DEM = 16, 8          # measurement / demand node counts
    F_MEAS, F_DEM = 8, 4           # input feature dims (may differ)
    HIDDEN, OUT = 32, 16
    E_MM, E_MD = 32, 24            # edge counts

    x_meas = jax.random.normal(k_xm, (N_MEAS, F_MEAS), jnp.float32)
    x_dem = jax.random.normal(k_xd, (N_DEM, F_DEM), jnp.float32)
    edge_mm = jax.random.randint(k_emm, (2, E_MM), 0, N_MEAS)          # meas -> meas
    src_md = jax.random.randint(k_emd, (E_MD,), 0, N_MEAS)             # meas -> demand
    dst_md = jax.random.randint(jax.random.fold_in(k_emd, 1), (E_MD,), 0, N_DEM)
    edge_md = jnp.stack([src_md, dst_md])
    edge_weight = jax.random.normal(k_ew, (E_MD,), jnp.float32)

    params = init_params(k_par, F_MEAS, F_DEM, HIDDEN, OUT)
    a_mm, a_md = build_adjacencies(edge_mm, edge_md, edge_weight, N_MEAS, N_DEM)

    forward = jax.jit(encoder_gnn_u_weighted)
    out = forward(x_meas, x_dem, a_mm, a_md, params)
    out = jax.block_until_ready(out)

    ref = reference_forward(x_meas, x_dem, a_mm, a_md, params)
    assert out.shape == (N_DEM, OUT)
    assert jnp.allclose(out, ref, atol=1e-4, rtol=1e-4)
    print("KERNEL_OK")
</pallas_src>

<mosaic_0001>
module attributes {stable_mosaic.version = 11 : i64} {
  func.func @encoder_kernel(%arg0: memref<16x128xf32, #tpu.memory_space<vmem>>, %arg1: memref<8x128xf32, #tpu.memory_space<vmem>>, %arg2: memref<24x16xf32, #tpu.memory_space<vmem>>, %arg3: memref<8x16xf32, #tpu.memory_space<vmem>>, %arg4: memref<256x128xf32, #tpu.memory_space<vmem>>, %arg5: memref<1x128xf32, #tpu.memory_space<vmem>>, %arg6: memref<256x128xf32, #tpu.memory_space<vmem>>, %arg7: memref<1x128xf32, #tpu.memory_space<vmem>>, %arg8: memref<256x32xf32, #tpu.memory_space<vmem>>, %arg9: memref<1x32xf32, #tpu.memory_space<vmem>>, %arg10: memref<32x16xf32, #tpu.memory_space<vmem>>, %arg11: memref<1x16xf32, #tpu.memory_space<vmem>>, %arg12: memref<8x16xf32, #tpu.memory_space<vmem>>) attributes {dimension_semantics = [], scalar_prefetch = 0 : i64, scratch_operands = 0 : i64, tpu.core_type = #tpu.core_type<tc>} {
    %c0 = arith.constant 0 : index
    %c0_0 = arith.constant 0 : index
    %0 = vector.load %arg0[%c0, %c0_0] : memref<16x128xf32, #tpu.memory_space<vmem>>, vector<16x128xf32>
    %c0_1 = arith.constant 0 : index
    %c0_2 = arith.constant 0 : index
    %1 = vector.load %arg1[%c0_1, %c0_2] : memref<8x128xf32, #tpu.memory_space<vmem>>, vector<8x128xf32>
    %c0_3 = arith.constant 0 : index
    %c0_4 = arith.constant 0 : index
    %2 = vector.load %arg2[%c0_3, %c0_4] : memref<24x16xf32, #tpu.memory_space<vmem>>, vector<24x16xf32>
    %cst = arith.constant dense<0.000000e+00> : vector<24x128xf32>
    %3 = tpu.matmul %2, %0, %cst {dimension_numbers = #tpu.dot_dimension_numbers<[1], [0], [0], [1], [0, 0, 1, 1], [], []>} : vector<24x16xf32>, vector<16x128xf32>, vector<24x128xf32> -> vector<24x128xf32>
    %4 = vector.extract_strided_slice %3 {offsets = [0, 0], sizes = [16, 128], strides = [1, 1]} : vector<24x128xf32> to vector<16x128xf32>
    %5 = vector.extract_strided_slice %3 {offsets = [16, 0], sizes = [8, 128], strides = [1, 1]} : vector<24x128xf32> to vector<8x128xf32>
    %6 = tpu.concatenate %4, %0 in 1 : vector<16x128xf32>, vector<16x128xf32> -> vector<16x256xf32>
    %c0_5 = arith.constant 0 : index
    %c0_6 = arith.constant 0 : index
    %7 = vector.load %arg4[%c0_5, %c0_6] : memref<256x128xf32, #tpu.memory_space<vmem>>, vector<256x128xf32>
    %cst_7 = arith.constant dense<0.000000e+00> : vector<16x128xf32>
    %8 = tpu.matmul %6, %7, %cst_7 {dimension_numbers = #tpu.dot_dimension_numbers<[1], [0], [0], [1], [0, 0, 1, 1], [], []>} : vector<16x256xf32>, vector<256x128xf32>, vector<16x128xf32> -> vector<16x128xf32>
    %c0_8 = arith.constant 0 : index
    %c0_9 = arith.constant 0 : index
    %9 = vector.load %arg5[%c0_8, %c0_9] : memref<1x128xf32, #tpu.memory_space<vmem>>, vector<1x128xf32>
    %10 = vector.broadcast %9 : vector<1x128xf32> to vector<16x128xf32>
    %11 = arith.addf %8, %10 : vector<16x128xf32>
    %cst_10 = arith.constant 0.000000e+00 : f32
    %12 = vector.broadcast %cst_10 : f32 to vector<16x128xf32>
    %13 = arith.maximumf %11, %12 : vector<16x128xf32>
    %14 = tpu.concatenate %5, %1 in 1 : vector<8x128xf32>, vector<8x128xf32> -> vector<8x256xf32>
    %c0_11 = arith.constant 0 : index
    %c0_12 = arith.constant 0 : index
    %15 = vector.load %arg6[%c0_11, %c0_12] : memref<256x128xf32, #tpu.memory_space<vmem>>, vector<256x128xf32>
    %cst_13 = arith.constant dense<0.000000e+00> : vector<8x128xf32>
    %16 = tpu.matmul %14, %15, %cst_13 {dimension_numbers = #tpu.dot_dimension_numbers<[1], [0], [0], [1], [0, 0, 1, 1], [], []>} : vector<8x256xf32>, vector<256x128xf32>, vector<8x128xf32> -> vector<8x128xf32>
    %c0_14 = arith.constant 0 : index
    %c0_15 = arith.constant 0 : index
    %17 = vector.load %arg7[%c0_14, %c0_15] : memref<1x128xf32, #tpu.memory_space<vmem>>, vector<1x128xf32>
    %18 = vector.broadcast %17 : vector<1x128xf32> to vector<8x128xf32>
    %19 = arith.addf %16, %18 : vector<8x128xf32>
    %cst_16 = arith.constant 0.000000e+00 : f32
    %20 = vector.broadcast %cst_16 : f32 to vector<8x128xf32>
    %21 = arith.maximumf %19, %20 : vector<8x128xf32>
    %c0_17 = arith.constant 0 : index
    %c0_18 = arith.constant 0 : index
    %22 = vector.load %arg3[%c0_17, %c0_18] : memref<8x16xf32, #tpu.memory_space<vmem>>, vector<8x16xf32>
    %cst_19 = arith.constant dense<0.000000e+00> : vector<8x128xf32>
    %23 = tpu.matmul %22, %13, %cst_19 {dimension_numbers = #tpu.dot_dimension_numbers<[1], [0], [0], [1], [0, 0, 1, 1], [], []>} : vector<8x16xf32>, vector<16x128xf32>, vector<8x128xf32> -> vector<8x128xf32>
    %24 = tpu.concatenate %23, %21 in 1 : vector<8x128xf32>, vector<8x128xf32> -> vector<8x256xf32>
    %c0_20 = arith.constant 0 : index
    %c0_21 = arith.constant 0 : index
    %25 = vector.load %arg8[%c0_20, %c0_21] : memref<256x32xf32, #tpu.memory_space<vmem>>, vector<256x32xf32>
    %cst_22 = arith.constant dense<0.000000e+00> : vector<8x32xf32>
    %26 = tpu.matmul %24, %25, %cst_22 {dimension_numbers = #tpu.dot_dimension_numbers<[1], [0], [0], [1], [0, 0, 1, 1], [], []>} : vector<8x256xf32>, vector<256x32xf32>, vector<8x32xf32> -> vector<8x32xf32>
    %c0_23 = arith.constant 0 : index
    %c0_24 = arith.constant 0 : index
    %27 = vector.load %arg9[%c0_23, %c0_24] : memref<1x32xf32, #tpu.memory_space<vmem>>, vector<1x32xf32>
    %28 = vector.broadcast %27 : vector<1x32xf32> to vector<8x32xf32>
    %29 = arith.addf %26, %28 : vector<8x32xf32>
    %cst_25 = arith.constant 0.000000e+00 : f32
    %30 = vector.broadcast %cst_25 : f32 to vector<8x32xf32>
    %31 = arith.maximumf %29, %30 : vector<8x32xf32>
    %c0_26 = arith.constant 0 : index
    %c0_27 = arith.constant 0 : index
    %32 = vector.load %arg10[%c0_26, %c0_27] : memref<32x16xf32, #tpu.memory_space<vmem>>, vector<32x16xf32>
    %cst_28 = arith.constant dense<0.000000e+00> : vector<8x16xf32>
    %33 = tpu.matmul %31, %32, %cst_28 {dimension_numbers = #tpu.dot_dimension_numbers<[1], [0], [0], [1], [0, 0, 1, 1], [], []>} : vector<8x32xf32>, vector<32x16xf32>, vector<8x16xf32> -> vector<8x16xf32>
    %c0_29 = arith.constant 0 : index
    %c0_30 = arith.constant 0 : index
    %34 = vector.load %arg11[%c0_29, %c0_30] : memref<1x16xf32, #tpu.memory_space<vmem>>, vector<1x16xf32>
    %35 = vector.broadcast %34 : vector<1x16xf32> to vector<8x16xf32>
    %36 = arith.addf %33, %35 : vector<8x16xf32>
    %c0_31 = arith.constant 0 : index
    %c0_32 = arith.constant 0 : index
    %37 = vector.load %arg12[%c0_31, %c0_32] : memref<8x16xf32, #tpu.memory_space<vmem>>, vector<8x16xf32>
    tpu.vector_store %arg12[%c0_31, %c0_32], %36 {strides = array<i32>} : memref<8x16xf32, #tpu.memory_space<vmem>>, vector<8x16xf32>,
    return
  }
}

</mosaic_0001>

<bundles_post_ra>
// kernel: encoder_gnn_u_weighted.1
= control target key start
LH: loop header
LB: loop body
LE: loop exit
PB: predicated region body
PF: predicated region fallthrough
CT: control target
= control target key end

     0   :  { %v945_v2 = vmov 0.0|0.0   ;;  %vm946_vm0 = vmmov 0   ;;  %v947_v4 = vmov 0.0   ;;  %vm48_vm1 = vcmask 130048   ;;  %s1382_s0 = inlined_call_operand.vmem [shape: f32[16,128], index: 0, kind: input, shape index: {}]   ;;  %s1383_s1 = inlined_call_operand.vmem [shape: f32[8,128], index: 1, kind: input, shape index: {}]   ;;  %s1384_s2 = inlined_call_operand.vmem [shape: f32[24,16], index: 2, kind: input, shape index: {}]   ;;  %s1385_s3 = inlined_call_operand.vmem [shape: f32[8,16], index: 3, kind: input, shape index: {}]   ;;  %s1386_s4 = inlined_call_operand.vmem [shape: f32[256,128], index: 4, kind: input, shape index: {}]   ;;  %s1387_s5 = inlined_call_operand.vmem [shape: f32[1,128], index: 5, kind: input, shape index: {}]   ;;  %s1388_s6 = inlined_call_operand.vmem [shape: f32[256,128], index: 6, kind: input, shape index: {}]   ;;  %s1389_s7 = inlined_call_operand.vmem [shape: f32[1,128], index: 7, kind: input, shape index: {}]   ;;  %s1390_s8 = inlined_call_operand.vmem [shape: f32[256,32], index: 8, kind: input, shape index: {}]   ;;  %s1391_s9 = inlined_call_operand.vmem [shape: f32[1,32], index: 9, kind: input, shape index: {}]   ;;  %s1392_s10 = inlined_call_operand.vmem [shape: f32[32,16], index: 10, kind: input, shape index: {}]   ;;  %s1393_s11 = inlined_call_operand.vmem [shape: f32[1,16], index: 11, kind: input, shape index: {}]   ;;  %s1394_s12 = inlined_call_operand.hbm [shape: f32[8,16], index: 12, kind: output, shape index: {}]  }
   0x1   :  { %v42_v0 = vld [vmem:[%s1382_s0] sm:$0xff]  ;;  %v1020_v1 = vld [vmem:[%s1382_s0 + $0x8] sm:$0xff]  ;;  %809 = vmatprep.subr.bf16.mxu0 %v945_v2  ;;  %782 = vmatprep.mubr.msk.f32.mxu0 %vm946_vm0, %v947_v4  ;;  %v156_v11 = vld [vmem:[%s1386_s4 + $0x90] sm:$0xff] }
   0x2   :  { %v810_v3 = vpack.c.bf16 %v1020_v1, %v42_v0  ;;  %v45_v5 = vld [vmem:[%s1384_s2] sm:$0xff]  ;;  %v155_v7 = vld [vmem:[%s1386_s4 + $0x88] sm:$0xff]  ;;  %241 = vmatprep.mubr.f32.mxu1 %v42_v0  ;;  %v157_v13 = vld [vmem:[%s1386_s4 + $0x98] sm:$0xff] }
   0x3   :  { %v154_v6 = vld [vmem:[%s1386_s4 + $0x80] sm:$0xff]  ;;  %v139_v10 = vld [vmem:[%s1386_s4 + $0x8] sm:$0xff]  ;;  %v140_v14 = vld [vmem:[%s1386_s4 + $0x10] sm:$0xff]  ;;  %v816_v16 = vpack.c.bf16 %v157_v13, %v156_v11 }
   0x4   :  { %v812_v8 = vpack.c.bf16 %v155_v7, %v154_v6  ;;  %v138_v9 = vld [vmem:[%s1386_s4] sm:$0xff]  ;;  %811 = vmatpush3.bf16.msra.mxu0 %v810_v3  ;;  %v141_v15 = vld [vmem:[%s1386_s4 + $0x18] sm:$0xff]  ;;  %v159_v18 = vld [vmem:[%s1386_s4 + $0xa8] sm:$0xff] }
   0x5   :  { %v814_v12 = vpack.c.bf16 %v139_v10, %v138_v9  ;;  %v158_v17 = vld [vmem:[%s1386_s4 + $0xa0] sm:$0xff]  ;;  %v818_v19 = vpack.c.bf16 %v141_v15, %v140_v14  ;;  %v143_v22 = vld [vmem:[%s1386_s4 + $0x28] sm:$0xff]  ;;  %v160_v24 = vld [vmem:[%s1386_s4 + $0xb0] sm:$0xff] }
   0x6   :  { %813 = vmatprep.subr.bf16.mxu1 %v812_v8  ;;  %v820_v20 = vpack.c.bf16 %v159_v18, %v158_v17  ;;  %v142_v21 = vld [vmem:[%s1386_s4 + $0x20] sm:$0xff]  ;;  %v46_v23 = vld [vmem:[%s1384_s2 + $0x8] sm:$0xff]  ;;  %v161_v25 = vld [vmem:[%s1386_s4 + $0xb8] sm:$0xff] }
   0x7   :  { %815 = vmatpush3.bf16.msra.mxu1 %v814_v12  ;;  %783 = vmatmul.mubr.msk.f32.vlgmr.msra.gmra.mrb[0].mxu0 %vm48_vm1, %v45_v5  ;;  %v822_v26 = vpack.c.bf16 %v143_v22, %v142_v21  ;;  %v824_v27 = vpack.c.bf16 %v161_v25, %v160_v24  ;;  %v144_v28 = vld [vmem:[%s1386_s4 + $0x30] sm:$0xff]  ;;  %v145_v29 = vld [vmem:[%s1386_s4 + $0x38] sm:$0xff]  ;;  %v162_v30 = vld [vmem:[%s1386_s4 + $0xc0] sm:$0xff] }
   0x8   :  { %817 = vmatprep.subr.bf16.mxu1 %v816_v16  ;;  %785 = vmatprep.mubr.msk.f32.mxu0 %vm946_vm0, %v947_v4  ;;  %v163_v31 = vld [vmem:[%s1386_s4 + $0xc8] sm:$0xff] }
   0xb   :  { %819 = vmatpush3.bf16.msra.mxu1 %v818_v19  ;;  %786 = vmatmul.mubr.msk.f32.gmra.mrb[2].mxu0 %vm48_vm1, %v46_v23 }
   0xc   :  { %821 = vmatprep.subr.bf16.mxu1 %v820_v20  ;;  %788 = vmatprep.mubr.msk.f32.mxu0 %vm946_vm0, %v947_v4 }
   0xd   :  { %17 = vsyncpa [#allocation3], 0  ;;  %v826_v32 = vpack.c.bf16 %v145_v29, %v144_v28  ;;  %v828_v33 = vpack.c.bf16 %v163_v31, %v162_v30  ;;  %v146_v34 = vld [vmem:[%s1386_s4 + $0x40] sm:$0xff]  ;;  %v147_v35 = vld [vmem:[%s1386_s4 + $0x48] sm:$0xff]  ;;  %vm559_vm2 = vcmask 261120   ;;  %s948_s27 = smov [#allocation2]  }
   0xe   :  { %v164_v36 = vld [vmem:[%s1386_s4 + $0xd0] sm:$0xff]  ;;  %v165_v37 = vld [vmem:[%s1386_s4 + $0xd8] sm:$0xff]  ;;  %v830_v38 = vpack.c.bf16 %v147_v35, %v146_v34  ;;  %v166_v42 = vld [vmem:[%s1386_s4 + $0xe0] sm:$0xff]  ;;  %s640_s28 = sshll.u32 %s948_s27, 4  ;;  %s641_s28 = int_to_ptr.vmem [resolvable:$true] %s640_s28 }
   0xf   :  { %823 = vmatpush3.bf16.msra.mxu1 %v822_v26  ;;  %v832_v39 = vpack.c.bf16 %v165_v37, %v164_v36  ;;  %v148_v40 = vld [vmem:[%s1386_s4 + $0x50] sm:$0xff]  ;;  %v149_v41 = vld [vmem:[%s1386_s4 + $0x58] sm:$0xff]  ;;  %v167_v43 = vld [vmem:[%s1386_s4 + $0xe8] sm:$0xff]  ;;  %p926_p1 = scmp.lt.s32.totalorder %s641_s28, %s641_s28 }
  0x10   :  { %825 = vmatprep.subr.bf16.mxu1 %v824_v27  ;;  %v834_v44 = vpack.c.bf16 %v149_v41, %v148_v40  ;;  %v836_v45 = vpack.c.bf16 %v167_v43, %v166_v42  ;;  %v150_v46 = vld [vmem:[%s1386_s4 + $0x60] sm:$0xff]  ;;  %v151_v47 = vld [vmem:[%s1386_s4 + $0x68] sm:$0xff]  ;;  %v168_v48 = vld [vmem:[%s1386_s4 + $0xf0] sm:$0xff] }
  0x11   :  { %v169_v49 = vld [vmem:[%s1386_s4 + $0xf8] sm:$0xff]  ;;  %v838_v50 = vpack.c.bf16 %v151_v47, %v150_v46  ;;  %v152_v52 = vld [vmem:[%s1386_s4 + $0x70] sm:$0xff]  ;;  %v270_v56 = vld [vmem:[%s1388_s6 + $0x80] sm:$0xff] }
  0x12   :  { %v840_v51 = vpack.c.bf16 %v169_v49, %v168_v48  ;;  %v153_v53 = vld [vmem:[%s1386_s4 + $0x78] sm:$0xff]  ;;  %v47_v55 = vld [vmem:[%s1384_s2 + $0x10] sm:$0xff]  ;;  %v271_v57 = vld [vmem:[%s1388_s6 + $0x88] sm:$0xff] }
  0x13   :  { %827 = vmatpush3.bf16.msra.mxu1 %v826_v32  ;;  %v842_v54 = vpack.c.bf16 %v153_v53, %v152_v52  ;;  %789 = vmatmul.mubr.msk.f32.gmra.mrb[4].mxu0 %vm48_vm1, %v47_v55  ;;  %v844_v58 = vpack.c.bf16 %v271_v57, %v270_v56  ;;  %v254_v59 = vld [vmem:[%s1388_s6] sm:$0xff]  ;;  %v255_v60 = vld [vmem:[%s1388_s6 + $0x8] sm:$0xff]  ;;  %v272_v61 = vld [vmem:[%s1388_s6 + $0x90] sm:$0xff] }
  0x14   :  { %829 = vmatprep.subr.bf16.mxu1 %v828_v33  ;;  %v846_v62 = vpack.c.bf16 %v255_v60, %v254_v59  ;;  %v273_v63 = vld [vmem:[%s1388_s6 + $0x98] sm:$0xff]  ;;  %v256_v0 = vld [vmem:[%s1388_s6 + $0x10] sm:$0xff]  ;;  %v274_v6 = vld [vmem:[%s1388_s6 + $0xa0] sm:$0xff] }
  0x15   :  { %v257_v3 = vld [vmem:[%s1388_s6 + $0x18] sm:$0xff]  ;;  %845 = vmatprep.subr.bf16.mxu0 %v844_v58  ;;  %v848_v5 = vpack.c.bf16 %v273_v63, %v272_v61  ;;  %v275_v7 = vld [vmem:[%s1388_s6 + $0xa8] sm:$0xff]  ;;  %v258_v10 = vld [vmem:[%s1388_s6 + $0x20] sm:$0xff] }
  0x16   :  { %847 = vmatpush3.bf16.msra.mxu0 %v846_v62  ;;  %v850_v8 = vpack.c.bf16 %v257_v3, %v256_v0  ;;  %v852_v9 = vpack.c.bf16 %v275_v7, %v274_v6  ;;  %v259_v11 = vld [vmem:[%s1388_s6 + $0x28] sm:$0xff]  ;;  %v276_v12 = vld [vmem:[%s1388_s6 + $0xb0] sm:$0xff]  ;;  %v277_v13 = vld [vmem:[%s1388_s6 + $0xb8] sm:$0xff] }
  0x17   :  { %831 = vmatpush3.bf16.msra.mxu1 %v830_v38  ;;  %849 = vmatprep.subr.bf16.mxu0 %v848_v5  ;;  %v854_v14 = vpack.c.bf16 %v259_v11, %v258_v10  ;;  %v856_v15 = vpack.c.bf16 %v277_v13, %v276_v12  ;;  %v260_v16 = vld [vmem:[%s1388_s6 + $0x30] sm:$0xff]  ;;  %v261_v17 = vld [vmem:[%s1388_s6 + $0x38] sm:$0xff]  ;;  %v278_v18 = vld [vmem:[%s1388_s6 + $0xc0] sm:$0xff] }
  0x18   :  { %833 = vmatprep.subr.bf16.mxu1 %v832_v39  ;;  %v279_v19 = vld [vmem:[%s1388_s6 + $0xc8] sm:$0xff]  ;;  %v858_v20 = vpack.c.bf16 %v261_v17, %v260_v16  ;;  %v262_v22 = vld [vmem:[%s1388_s6 + $0x40] sm:$0xff]  ;;  %v280_v24 = vld [vmem:[%s1388_s6 + $0xd0] sm:$0xff] }
  0x19   :  { %v860_v21 = vpack.c.bf16 %v279_v19, %v278_v18  ;;  %v263_v23 = vld [vmem:[%s1388_s6 + $0x48] sm:$0xff]  ;;  %v281_v25 = vld [vmem:[%s1388_s6 + $0xd8] sm:$0xff]  ;;  %v264_v28 = vld [vmem:[%s1388_s6 + $0x50] sm:$0xff] }
  0x1a   :  { %851 = vmatpush3.bf16.msra.mxu0 %v850_v8  ;;  %v862_v26 = vpack.c.bf16 %v263_v23, %v262_v22  ;;  %v864_v27 = vpack.c.bf16 %v281_v25, %v280_v24  ;;  %v265_v29 = vld [vmem:[%s1388_s6 + $0x58] sm:$0xff]  ;;  %v282_v35 = vld [vmem:[%s1388_s6 + $0xe0] sm:$0xff]  ;;  %v283_v36 = vld [vmem:[%s1388_s6 + $0xe8] sm:$0xff] }
  0x1b   :  { %835 = vmatpush3.bf16.msra.mxu1 %v834_v44  ;;  %853 = vmatprep.subr.bf16.mxu0 %v852_v9  ;;  %v866_v30 = vpack.c.bf16 %v265_v29, %v264_v28  ;;  %v868_v37 = vpack.c.bf16 %v283_v36, %v282_v35  ;;  %v266_v38 = vld [vmem:[%s1388_s6 + $0x60] sm:$0xff]  ;;  %v284_v40 = vld [vmem:[%s1388_s6 + $0xf0] sm:$0xff]  ;;  %v285_v41 = vld [vmem:[%s1388_s6 + $0xf8] sm:$0xff] }
  0x1c   :  { %837 = vmatprep.subr.bf16.mxu1 %v836_v45  ;;  %v872_v42 = vpack.c.bf16 %v285_v41, %v284_v40  ;;  %v268_v43 = vld [vmem:[%s1388_s6 + $0x70] sm:$0xff]  ;;  %v269_v44 = vld [vmem:[%s1388_s6 + $0x78] sm:$0xff]  ;;  %v44_v46 = vld [vmem:[%s1383_s1] sm:$0xff] }
  0x1d   :  { %v874_v45 = vpack.c.bf16 %v269_v44, %v268_v43  ;;  %357 = vmatprep.mubr.f32.mxu0 %v44_v46  ;;  %v454_v49 = vld [vmem:[%s1390_s8 + $0x80] sm:$0xff]  ;;  %v439_v53 = vld [vmem:[%s1390_s8 + $0x8] sm:$0xff]  ;;  %v457_v55 = vld [vmem:[%s1390_s8 + $0x98] sm:$0xff] }
  0x1e   :  { %855 = vmatpush3.bf16.msra.mxu0 %v854_v14  ;;  %v440_v58 = vld [vmem:[%s1390_s8 + $0x10] sm:$0xff]  ;;  %v441_v59 = vld [vmem:[%s1390_s8 + $0x18] sm:$0xff]  ;;  %v458_v60 = vld [vmem:[%s1390_s8 + $0xa0] sm:$0xff] }
  0x1f   :  { %839 = vmatpush3.bf16.msra.mxu1 %v838_v50  ;;  %857 = vmatprep.subr.bf16.mxu0 %v856_v15  ;;  %v455_v50 = vld [vmem:[%s1390_s8 + $0x88] sm:$0xff]  ;;  %v885_v62 = vpack.c.bf16 %v441_v59, %v440_v58  ;;  %v442_v0 = vld [vmem:[%s1390_s8 + $0x20] sm:$0xff]  ;;  %v460_v5 = vld [vmem:[%s1390_s8 + $0xb0] sm:$0xff] }
  0x20   :  { %841 = vmatprep.subr.bf16.mxu1 %v840_v51  ;;  %v438_v51 = vld [vmem:[%s1390_s8] sm:$0xff]  ;;  %v879_v52 = vpack.c.bf16 %v455_v50, %v454_v49  ;;  %v459_v61 = vld [vmem:[%s1390_s8 + $0xa8] sm:$0xff]  ;;  %v461_v6 = vld [vmem:[%s1390_s8 + $0xb8] sm:$0xff] }
  0x21   :  { %v881_v56 = vpack.c.bf16 %v439_v53, %v438_v51  ;;  %v887_v63 = vpack.c.bf16 %v459_v61, %v458_v60  ;;  %v443_v3 = vld [vmem:[%s1390_s8 + $0x28] sm:$0xff]  ;;  %v891_v8 = vpack.c.bf16 %v461_v6, %v460_v5  ;;  %v444_v9 = vld [vmem:[%s1390_s8 + $0x30] sm:$0xff]  ;;  %v445_v10 = vld [vmem:[%s1390_s8 + $0x38] sm:$0xff] }
  0x22   :  { %859 = vmatpush3.bf16.msra.mxu0 %v858_v20  ;;  %v889_v7 = vpack.c.bf16 %v443_v3, %v442_v0  ;;  %v462_v11 = vld [vmem:[%s1390_s8 + $0xc0] sm:$0xff]  ;;  %v463_v12 = vld [vmem:[%s1390_s8 + $0xc8] sm:$0xff]  ;;  %v893_v13 = vpack.c.bf16 %v445_v10, %v444_v9  ;;  %v464_v17 = vld [vmem:[%s1390_s8 + $0xd0] sm:$0xff] }
  0x23   :  { %843 = vmatpush3.bf16.msra.mxu1 %v842_v54  ;;  %861 = vmatprep.subr.bf16.mxu0 %v860_v21  ;;  %v456_v54 = vld [vmem:[%s1390_s8 + $0x90] sm:$0xff]  ;;  %v895_v14 = vpack.c.bf16 %v463_v12, %v462_v11  ;;  %v446_v15 = vld [vmem:[%s1390_s8 + $0x40] sm:$0xff]  ;;  %v447_v16 = vld [vmem:[%s1390_s8 + $0x48] sm:$0xff] }
  0x24   :  { %v883_v57 = vpack.c.bf16 %v457_v55, %v456_v54  ;;  %880 = vmatprep.subr.bf16.mxu1 %v879_v52  ;;  %v465_v18 = vld [vmem:[%s1390_s8 + $0xd8] sm:$0xff]  ;;  %v897_v19 = vpack.c.bf16 %v447_v16, %v446_v15  ;;  %v448_v21 = vld [vmem:[%s1390_s8 + $0x50] sm:$0xff]  ;;  %v466_v24 = vld [vmem:[%s1390_s8 + $0xe0] sm:$0xff] }
  0x25   :  { %v899_v20 = vpack.c.bf16 %v465_v18, %v464_v17  ;;  %v449_v22 = vld [vmem:[%s1390_s8 + $0x58] sm:$0xff]  ;;  %v467_v25 = vld [vmem:[%s1390_s8 + $0xe8] sm:$0xff]  ;;  %v468_v29 = vld [vmem:[%s1390_s8 + $0xf0] sm:$0xff] }
  0x26   :  { %863 = vmatpush3.bf16.msra.mxu0 %v862_v26  ;;  %v901_v23 = vpack.c.bf16 %v449_v22, %v448_v21  ;;  %v450_v26 = vld [vmem:[%s1390_s8 + $0x60] sm:$0xff]  ;;  %v451_v28 = vld [vmem:[%s1390_s8 + $0x68] sm:$0xff]  ;;  %v550_v58 = vld [vmem:[%s1392_s10 + $0x10] sm:$0xff] }
  0x27   :  { %865 = vmatprep.subr.bf16.mxu0 %v864_v27  ;;  %v903_v27 = vpack.c.bf16 %v467_v25, %v466_v24  ;;  %v652_v49 = vld [vmem:[%s1389_s7] ss:$0 sm:$0xff]  ;;  %v551_v59 = vld [vmem:[%s1392_s10 + $0x18] sm:$0xff] }
  0x28   :  { %v915_v60 = vpack.c.bf16 %v551_v59, %v550_v58  ;;  %v655_v5 = vld [vmem:[%s1393_s11] ss:$0 sm:$0xff] }
  0x2a   :  { %867 = vmatpush3.bf16.msra.mxu0 %v866_v30  ;;  %v469_v30 = vld [vmem:[%s1390_s8 + $0xf8] sm:$0xff] }
  0x2b   :  { %869 = vmatprep.subr.bf16.mxu0 %v868_v37 }
  0xda   :  { %v124_v31 = vpop.f32.mrb[0].mxu0 }
  0xdb   :  { %v784_v32 = vpop.f32.mrb[1].mxu0  ;;  %242 = vmatmul.mubr.f32.vlgmr.msra.gmra.mrb[0].mxu1 %v124_v31  ;;  %v905_v31 = vpack.c.bf16 %v451_v28, %v450_v26 }
  0xdc   :  { %246 = vmatprep.mubr.f32.mxu1 %v1020_v1  ;;  %v267_v1 = vld [vmem:[%s1388_s6 + $0x68] sm:$0xff]  ;;  %882 = vmatpush3.bf16.msra.mxu1 %v881_v56  ;;  %v907_v32 = vpack.c.bf16 %v469_v30, %v468_v29  ;;  %v548_v56 = vld [vmem:[%s1392_s10] sm:$0xff] }
  0xdd   :  { %v870_v39 = vpack.c.bf16 %v267_v1, %v266_v38  ;;  %884 = vmatprep.subr.bf16.mxu1 %v883_v57  ;;  %v651_v1 = vld [vmem:[%s1387_s5] ss:$0 sm:$0xff] }
  0xde   :  { %v129_v33 = vpop.f32.mrb[2].mxu0 }
  0xdf   :  { %v787_v34 = vpop.f32.mrb[3].mxu0  ;;  %247 = vmatmul.mubr.f32.gmra.mrb[2].mxu1 %v129_v33  ;;  %871 = vmatpush3.bf16.msra.mxu0 %v870_v39  ;;  %v452_v33 = vld [vmem:[%s1390_s8 + $0x70] sm:$0xff] }
  0xe0   :  { %873 = vmatprep.subr.bf16.mxu0 %v872_v42  ;;  %886 = vmatpush3.bf16.msra.mxu1 %v885_v62  ;;  %v453_v34 = vld [vmem:[%s1390_s8 + $0x78] sm:$0xff]  ;;  %v654_v62 = vld [vmem:[%s1391_s9] ss:$0 sm:$0xff] }
  0xe1   :  { %888 = vmatprep.subr.bf16.mxu1 %v887_v63  ;;  %v909_v35 = vpack.c.bf16 %v453_v34, %v452_v33 }
  0xe3   :  { %875 = vmatpush3.bf16.msra.mxu0 %v874_v45 }
  0xe4   :  { %876 = vmatprep.subr.bf16.mxu0 %v945_v2  ;;  %890 = vmatpush3.bf16.msra.mxu1 %v889_v7 }
  0xe5   :  { %892 = vmatprep.subr.bf16.mxu1 %v891_v8 }
  0xe6   :  { %v134_v47 = vpop.f32.mrb[4].mxu0 }
  0xe7   :  { %v790_v48 = vpop.f32.mrb[5].mxu0  ;;  %358 = vmatmul.mubr.f32.vlgmr.msra.gmra.mrb[6].mxu0 %v134_v47  ;;  %v364_v47 = vld [vmem:[%s1385_s3] sm:$0xff] }
  0xe8   :  { %795 = vmatprep.mubr.msk.f32.mxu0 %vm946_vm0, %v947_v4  ;;  %894 = vmatpush3.bf16.msra.mxu1 %v893_v13 }
  0xe9   :  { %896 = vmatprep.subr.bf16.mxu1 %v895_v14 }
  0xec   :  { %898 = vmatpush3.bf16.msra.mxu1 %v897_v19 }
  0xed   :  { %900 = vmatprep.subr.bf16.mxu1 %v899_v20 }
  0xf0   :  { %902 = vmatpush3.bf16.msra.mxu1 %v901_v23 }
  0xf1   :  { %904 = vmatprep.subr.bf16.mxu1 %v903_v27 }
  0xf4   :  { %906 = vmatpush3.bf16.msra.mxu1 %v905_v31 }
  0xf5   :  { %908 = vmatprep.subr.bf16.mxu1 %v907_v32 }
  0xf8   :  { %910 = vmatpush3.bf16.msra.mxu1 %v909_v35 }
 0x1ae   :  { %v694_v36 = vpop.f32.mrb[0].mxu1 }
 0x1af   :  { %v695_v37 = vpop.f32.mrb[1].mxu1 }
 0x1b0   :  { %v696_v38 = vadd.f32 %v695_v37, %v694_v36 }
 0x1b2   :  { %v697_v39 = vpop.f32.mrb[2].mxu1  ;;  %v244_v41 = vadd.f32 %v696_v38, %v651_v1 }
 0x1b3   :  { %v698_v40 = vpop.f32.mrb[3].mxu1 }
 0x1b4   :  { %v699_v42 = vadd.f32 %v698_v40, %v697_v39  ;;  %v252_v44 = vmax.f32 %v244_v41, 0.0 }
 0x1b6   :  { %v249_v43 = vadd.f32 %v699_v42, %v651_v1 }
 0x1b8   :  { %v253_v45 = vmax.f32 %v249_v43, 0.0 }
 0x1ba   :  { %v877_v46 = vpack.c.bf16 %v253_v45, %v252_v44  ;;  %v732_v48 = vpop.f32.mrb[6].mxu0 }
 0x1bb   :  { %v733_v50 = vpop.f32.mrb[7].mxu0 }
 0x1bc   :  { %878 = vmatpush3.bf16.msra.mxu0 %v877_v46  ;;  %v734_v51 = vadd.f32 %v733_v50, %v732_v48 }
 0x1bd   :  { %911 = vmatprep.subr.bf16.mxu0 %v945_v2 }
 0x1be   :  { %v360_v52 = vadd.f32 %v734_v51, %v652_v49 }
 0x1bf   :  { %796 = vmatmul.mubr.msk.f32.vlgmr.msra.gmra.mrb[8].mxu0 %vm48_vm1, %v364_v47 }
 0x1c0   :  { %806 = vmatprep.mubr.msk.f32.mxu0 %vm946_vm0, %v947_v4  ;;  %v363_v53 = vmax.f32 %v360_v52, 0.0  ;;  %v549_v4 = vld [vmem:[%s1392_s10 + $0x8] sm:$0xff]  ;;  %s921_s10 = scalar_lea.vmem %s641_s28, 128 }
 0x1c1   :  { %v912_v57 = vpack.c.bf16 %v549_v4, %v548_v56  ;;  %p922_p0 = scmp.ne.s32.totalorder %s641_s28, %s921_s10  ;;  %p927_p2 = scmp.lt.s32.totalorder %s921_s10, %s921_s10 }
 0x1c2   :  { %541 = vmatprep.mubr.f32.mxu1 %v363_v53 }
 0x1c3   :  { %913 = vmatpush3.bf16.msra.mxu0 %v912_v57  ;;  %p928_p3 = por %p927_p2, %p926_p1 }
 0x1c4   :  { %914 = vmatprep.subr.bf16.mxu0 %v945_v2 }
 0x1c5   :  { %p929_p4 = pnand %p928_p3, %p922_p0 }
 0x1c7   :  { %916 = vmatpush3.bf16.msra.mxu0 %v915_v60 }
 0x292   :  { %v434_v54 = vpop.f32.mrb[8].mxu0 }
 0x293   :  { %v797_v55 = vpop.f32.mrb[9].mxu0  ;;  %542 = vmatmul.mubr.f32.vlgmr.msra.gmra.mrb[4].mxu1 %v434_v54 }
 0x366   :  { %v770_v61 = vpop.f32.mrb[4].mxu1 }
 0x367   :  { %v771_v63 = vpop.f32.mrb[5].mxu1 }
 0x368   :  { %v772_v0 = vadd.f32 %v771_v63, %v770_v61 }
 0x36a   :  { %v544_v3 = vadd.f32 %v772_v0, %v654_v62 }
 0x36c   :  { %v547_v2 = vmax.f32 %v544_v3, 0.0 }
 0x36e   :  { %807 = vmatmul.mubr.msk.f32.vlgmr.msra.gmra.mrb[10].mxu0 %vm559_vm2, %v547_v2 }
 0x441   :  { %v629_v6 = vpop.f32.mrb[10].mxu0 }
 0x442   :  { %v630_v7 = vadd.f32 %v655_v5, %v629_v6  ;;  %v808_v8 = vpop.f32.mrb[11].mxu0 }
 0x444   :  { %633 = vst.msk [vmem:[#allocation2] sm:$0xff] %vm48_vm1, %v630_v7 }
 0x445   :  { %932 = shalt.err (!%p929_p4)
}
 0x446   :  { %s933_s29 = scalar_lea.hbm %s1394_s12, 128 }
 0x447   :  { %p934_p5 = scmp.ne.s32.totalorder %s1394_s12, %s933_s29  ;;  %p937_p6 = scmp.lt.u32.totalorder %s933_s29, %s1394_s12 }
 0x449   :  { %p939_p7 = pnand %p937_p6, %p934_p5 }
 0x44b   :  { %942 = shalt.err (!%p939_p7)
}
 0x44c   :  { %643 = dma.vmem_to_hbm [thread:$0]  %s641_s28, 128, %s1394_s12, [#allocation3]  }
 0x44d   :  { %943 = dma.done.wait [#allocation3], 128  }
 0x44e   :  { %944 = vsyncadd [#allocation3], 4294967168 }
 0x44f   :  { %647 = vsyncpa [#allocation3], 1 }

</bundles_post_ra>
